<compile_context>
chip_gen: v7x
topology: tpu7x:2x2x1
jax: 0.10.0
libtpu: 0.0.40
codegen_flags: <defaults>
</compile_context>

<pallas_src>
import functools

import numpy as np
import jax
import jax.numpy as jnp
from jax.experimental import pallas as pl
from jax.experimental.pallas import tpu as pltpu


def _round_up(x, m):
    return ((x + m - 1) // m) * m


# ----------------------------------------------------------------------------
# Fused kernel: encoder MLP + bounded-window segment-sum accumulate over row
# tiles; residual head + decoder on the last grid step.  Grid axis 0 iterates
# row tiles (reduction -> "arbitrary"); the (n_seg_acc, hidden_pad) accumulator
# lives in VMEM scratch; the (n_seg_acc, out_pad) output block is resident
# across the grid.
# ----------------------------------------------------------------------------
def _fused_kernel(seg_start_ref,                     # scalar-prefetch (SMEM)
                  segids_ref, x_ref, w1_ref, b1_ref, w2_ref, b2_ref,
                  w3_ref, b3_ref, w4_ref, b4_ref, wd_ref, bd_ref,
                  out_ref, acc_ref, *, seg_block):
    step = pl.program_id(0)

    @pl.when(step == 0)
    def _():
        acc_ref[...] = jnp.zeros_like(acc_ref)

    # segment_encoder: Linear -> ReLU -> Linear -> ReLU
    # (bf16 streams, f32 MXU accumulation, f32 bias/ReLU — v5e has no bf16 VPU)
    h = jnp.dot(x_ref[...], w1_ref[...], preferred_element_type=jnp.float32)
    h = jnp.maximum(h + b1_ref[...], 0.0)
    h = jnp.dot(h.astype(w2_ref.dtype), w2_ref[...],
                preferred_element_type=jnp.float32)
    h = jnp.maximum(h + b2_ref[...], 0.0)                 # (tile_n, hidden_pad) f32

    # Bounded-window scatter_add as a lane-dense masked matmul (bf16 operands):
    #   window = [seg_start, seg_start + seg_block)   (8-aligned, prefetched)
    #   mask[r_rel, r] = (segment_id[r] == seg_start + r_rel)
    #   acc[window]   += mask @ h
    # Padded rows carry segment id == n_seg which either falls outside the
    # window (contributes nothing) or lands on a padding row of acc.
    tile_n = x_ref.shape[0]
    seg_start = pl.multiple_of(seg_start_ref[step], 8)
    rel_iota = jax.lax.broadcasted_iota(jnp.int32, (seg_block, tile_n), 0)
    mask = (segids_ref[...] == (rel_iota + seg_start)).astype(jnp.bfloat16)
    partial = jnp.dot(mask, h.astype(jnp.bfloat16),
                      preferred_element_type=jnp.float32)  # (seg_block, hidden_pad)
    acc_ref[pl.ds(seg_start, seg_block), :] += partial

    # Residual head + decoder fused into the last grid step (single launch,
    # no HBM round-trip of the segment sum).  Head stays f32.
    @pl.when(step == pl.num_programs(0) - 1)
    def _():
        s = acc_ref[...]                                   # (n_seg_acc, hidden_pad)
        o = jnp.maximum(
            jnp.dot(s, w3_ref[...], preferred_element_type=jnp.float32)
            + b3_ref[...], 0.0) + s
        o = jnp.maximum(
            jnp.dot(o, w4_ref[...], preferred_element_type=jnp.float32)
            + b4_ref[...], 0.0) + o
        out_ref[...] = (jnp.dot(o, wd_ref[...],
                                preferred_element_type=jnp.float32)
                        + bd_ref[...])


def segment_sum_mlp_forward(segment_sizes, features, params, *,
                            max_row_tile=4096,
                            compute_dtype=jnp.bfloat16):
    """Pallas implementation of SegmentSumMLPModule.forward
    (use_norm=False, add_sigmoid=False)."""
    w1, b1, w2, b2, w3, b3, w4, b4, wd, bd = params
    n_seg = int(segment_sizes.shape[0])
    n_rows, in_dim = features.shape
    hidden = w1.shape[1]
    out_dim = wd.shape[1]

    # Lane-dense padded sizes (exact: zero columns/rows propagate as zeros).
    hidden_pad = _round_up(hidden, 128)
    out_pad = _round_up(out_dim, 128)
    # Accumulator rows: n_seg real segments + 1 pad-sentinel row, sublane-padded.
    n_seg_acc = _round_up(n_seg + 1, 8)

    # --- row tile: as large as possible (multiple of 128), or the full
    #     (rounded) row count if everything fits in a single step.
    if n_rows <= max_row_tile:
        tile_n = _round_up(max(n_rows, 1), 16)
    else:
        tile_n = _round_up(max_row_tile, 128)
    n_pad = _round_up(n_rows, tile_n)
    pad = n_pad - n_rows
    num_tiles = n_pad // tile_n

    # --- segment ids via repeat_interleave; pad rows carry id == n_seg.
    segment_ids = jnp.repeat(jnp.arange(n_seg, dtype=jnp.int32),
                             segment_sizes.astype(jnp.int32),
                             total_repeat_length=n_rows)
    segids_flat = jnp.pad(segment_ids, (0, pad), constant_values=n_seg)
    segids_p = segids_flat.reshape(1, n_pad)               # lane-dense ids

    # --- bounded-segment window: SEG_BLOCK from concrete sizes when available.
    try:
        sizes_np = np.asarray(segment_sizes).astype(np.int64)
    except Exception:                                       # traced sizes
        sizes_np = None
    if sizes_np is not None:
        if int(sizes_np.sum()) != n_rows:
            raise ValueError(
                "segment_sizes must sum to features.shape[0] "
                f"({int(sizes_np.sum())} != {n_rows})")
        ids_np = np.repeat(np.arange(n_seg, dtype=np.int64), sizes_np)
        ids_np = np.pad(ids_np, (0, pad), constant_values=n_seg)
        tiles_np = ids_np.reshape(num_tiles, tile_n)
        max_span = int((tiles_np[:, -1] - tiles_np[:, 0]).max()) + 1
        # +7 covers the 8-alignment of the window start.
        seg_block = min(n_seg_acc, _round_up(max_span + 7, 8))
    else:
        seg_block = n_seg_acc                               # always-correct fallback

    # Per-tile window starts: 8-aligned, clamped so the window stays in acc.
    max_start = n_seg_acc - seg_block                       # multiple of 8, >= 0
    first_ids = segids_flat.reshape(num_tiles, tile_n)[:, 0]
    seg_starts = jnp.minimum((first_ids // 8) * 8, max_start).astype(jnp.int32)

    # --- features: single fused pad + bf16 cast (no f32 intermediate pass).
    feats_p = jnp.pad(features, ((0, pad), (0, 0))).astype(compute_dtype)

    # --- weights: zero-pad to lane-dense shapes; encoder streams bf16,
    #     head stays f32.
    def pad2(w, r, c):
        return jnp.pad(w, ((0, r - w.shape[0]), (0, c - w.shape[1])))

    def pad1(b, c):
        return jnp.pad(b, (0, c - b.shape[0])).reshape(1, c).astype(jnp.float32)

    w1c = pad2(w1, in_dim, hidden_pad).astype(compute_dtype)
    w2c = pad2(w2, hidden_pad, hidden_pad).astype(compute_dtype)
    b1r = pad1(b1, hidden_pad)
    b2r = pad1(b2, hidden_pad)
    w3f = pad2(w3, hidden_pad, hidden_pad).astype(jnp.float32)
    b3r = pad1(b3, hidden_pad)
    w4f = pad2(w4, hidden_pad, hidden_pad).astype(jnp.float32)
    b4r = pad1(b4, hidden_pad)
    wdf = pad2(wd, hidden_pad, out_pad).astype(jnp.float32)
    bdr = pad1(bd, out_pad)

    # --- VMEM ask sized from the actual working set (clamped 16..64 MiB).
    vmem_estimate = (
        2 * tile_n * (in_dim * 2 + 4)                       # dbl-buffered feats + ids
        + (in_dim + 3 * hidden_pad) * hidden_pad * 4        # resident weights
        + hidden_pad * out_pad * 4
        + n_seg_acc * (hidden_pad + 2 * out_pad) * 4        # acc + dbl-buffered out
        + tile_n * hidden_pad * 4 * 3                       # h intermediates
        + seg_block * (tile_n * 2 + hidden_pad * 4)         # mask + partial
    )
    vmem_limit = int(min(64 * 2**20, max(16 * 2**20, 2 * vmem_estimate)))

    full = lambda i, *_: (0, 0)   # resident full-block weights/biases/output

    out = pl.pallas_call(
        functools.partial(_fused_kernel, seg_block=seg_block),
        out_shape=jax.ShapeDtypeStruct((n_seg_acc, out_pad), jnp.float32),
        grid_spec=pltpu.PrefetchScalarGridSpec(
            num_scalar_prefetch=1,                           # seg_starts -> SMEM
            grid=(num_tiles,),
            in_specs=[
                pl.BlockSpec((1, tile_n), lambda i, *_: (0, i)),       # segment ids
                pl.BlockSpec((tile_n, in_dim), lambda i, *_: (i, 0)),  # features
                pl.BlockSpec((in_dim, hidden_pad), full),              # W1
                pl.BlockSpec((1, hidden_pad), full),                   # b1
                pl.BlockSpec((hidden_pad, hidden_pad), full),          # W2
                pl.BlockSpec((1, hidden_pad), full),                   # b2
                pl.BlockSpec((hidden_pad, hidden_pad), full),          # W3 (l0)
                pl.BlockSpec((1, hidden_pad), full),                   # b3
                pl.BlockSpec((hidden_pad, hidden_pad), full),          # W4 (l1)
                pl.BlockSpec((1, hidden_pad), full),                   # b4
                pl.BlockSpec((hidden_pad, out_pad), full),             # Wd (decoder)
                pl.BlockSpec((1, out_pad), full),                      # bd
            ],
            out_specs=pl.BlockSpec((n_seg_acc, out_pad), full),
            scratch_shapes=[pltpu.VMEM((n_seg_acc, hidden_pad), jnp.float32)],
        ),
        compiler_params=pltpu.CompilerParams(
            dimension_semantics=("arbitrary",),
            vmem_limit_bytes=vmem_limit,
        ),
    )(seg_starts, segids_p, feats_p,
      w1c, b1r, w2c, b2r, w3f, b3r, w4f, b4r, wdf, bdr)

    return jnp.squeeze(out[:n_seg, :out_dim])   # matches torch .squeeze()


# ----------------------------------------------------------------------------
# Pure-JAX reference (mirrors the kernel's bf16 streaming / f32 accumulation).
# ----------------------------------------------------------------------------
def _reference(segment_sizes, features, params, compute_dtype=jnp.bfloat16):
    w1, b1, w2, b2, w3, b3, w4, b4, wd, bd = params
    n_seg = segment_sizes.shape[0]
    x = features.astype(compute_dtype)
    h = jnp.maximum(jnp.dot(x, w1.astype(compute_dtype),
                            preferred_element_type=jnp.float32) + b1, 0.0)
    h = jnp.maximum(jnp.dot(h.astype(compute_dtype), w2.astype(compute_dtype),
                            preferred_element_type=jnp.float32) + b2, 0.0)
    seg_ids = jnp.repeat(jnp.arange(n_seg), segment_sizes.astype(jnp.int32),
                         total_repeat_length=features.shape[0])
    h_b = h.astype(compute_dtype).astype(jnp.float32)       # bf16 scatter operand
    segsum = jnp.zeros((n_seg, h.shape[1]), jnp.float32).at[seg_ids].add(h_b)
    o = jnp.maximum(segsum @ w3 + b3, 0.0) + segsum
    o = jnp.maximum(o @ w4 + b4, 0.0) + o
    return jnp.squeeze(o @ wd + bd)


def _make_params(key, in_dim, hidden_dim, out_dim, scale=0.1):
    keys = jax.random.split(key, 10)
    return (
        scale * jax.random.normal(keys[0], (in_dim, hidden_dim), jnp.float32),    # W1
        scale * jax.random.normal(keys[1], (hidden_dim,), jnp.float32),           # b1
        scale * jax.random.normal(keys[2], (hidden_dim, hidden_dim), jnp.float32),# W2
        scale * jax.random.normal(keys[3], (hidden_dim,), jnp.float32),           # b2
        scale * jax.random.normal(keys[4], (hidden_dim, hidden_dim), jnp.float32),# W3
        scale * jax.random.normal(keys[5], (hidden_dim,), jnp.float32),           # b3
        scale * jax.random.normal(keys[6], (hidden_dim, hidden_dim), jnp.float32),# W4
        scale * jax.random.normal(keys[7], (hidden_dim,), jnp.float32),           # b4
        scale * jax.random.normal(keys[8], (hidden_dim, out_dim), jnp.float32),   # Wd
        scale * jax.random.normal(keys[9], (out_dim,), jnp.float32),              # bd
    )


if __name__ == "__main__":
    in_dim, hidden_dim, out_dim = 16, 32, 1
    key = jax.random.PRNGKey(0)
    kp, kf1, kf2, kf3 = jax.random.split(key, 4)
    params = _make_params(kp, in_dim, hidden_dim, out_dim)

    # Test 1: tiny input (single row tile, same shapes as the module's toy use).
    segment_sizes1 = jnp.array([2, 3, 1, 2], dtype=jnp.int32)   # 8 rows, 4 segs
    n_rows1 = int(segment_sizes1.sum())
    features1 = jax.random.normal(kf1, (n_rows1, in_dim), jnp.float32)
    out1 = jax.block_until_ready(
        segment_sum_mlp_forward(segment_sizes1, features1, params))
    ref1 = _reference(segment_sizes1, features1, params)
    assert out1.shape == (segment_sizes1.shape[0],), out1.shape
    assert jnp.allclose(out1, ref1, atol=1e-3, rtol=1e-3), (out1, ref1)

    # Test 2: multi-tile accumulation path (max_row_tile=128 -> 3 grid steps,
    # padded rows masked out; window degenerates to the full segment range).
    segment_sizes2 = jnp.array([70, 40, 55, 65, 30, 40], dtype=jnp.int32)  # 300 rows
    n_rows2 = int(segment_sizes2.sum())
    features2 = jax.random.normal(kf2, (n_rows2, in_dim), jnp.float32)
    out2 = jax.block_until_ready(
        segment_sum_mlp_forward(segment_sizes2, features2, params,
                                max_row_tile=128))
    ref2 = _reference(segment_sizes2, features2, params)
    assert out2.shape == (segment_sizes2.shape[0],), out2.shape
    assert jnp.allclose(out2, ref2, atol=1e-2, rtol=1e-2), (out2, ref2)

    # Test 3: many segments -> exercises the bounded-window scatter with a
    # SEG_BLOCK strictly smaller than n_seg and non-zero prefetched offsets.
    segment_sizes3 = jnp.full((40,), 25, dtype=jnp.int32)       # 1000 rows, 40 segs
    n_rows3 = int(segment_sizes3.sum())
    features3 = jax.random.normal(kf3, (n_rows3, in_dim), jnp.float32)
    out3 = jax.block_until_ready(
        segment_sum_mlp_forward(segment_sizes3, features3, params,
                                max_row_tile=128))
    ref3 = _reference(segment_sizes3, features3, params)
    assert out3.shape == (segment_sizes3.shape[0],), out3.shape
    assert jnp.allclose(out3, ref3, atol=1e-2, rtol=1e-2), (out3, ref3)

    print("KERNEL_OK")
</pallas_src>

<mosaic_0001>
module attributes {stable_mosaic.version = 11 : i64} {
  func.func @_fused_kernel(%arg0: i32, %arg1: memref<1xi32, #tpu.memory_space<smem>>, %arg2: memref<1x16xi32, #tpu.memory_space<vmem>>, %arg3: memref<16x16xbf16, #tpu.memory_space<vmem>>, %arg4: memref<16x128xbf16, #tpu.memory_space<vmem>>, %arg5: memref<1x128xf32, #tpu.memory_space<vmem>>, %arg6: memref<128x128xbf16, #tpu.memory_space<vmem>>, %arg7: memref<1x128xf32, #tpu.memory_space<vmem>>, %arg8: memref<128x128xf32, #tpu.memory_space<vmem>>, %arg9: memref<1x128xf32, #tpu.memory_space<vmem>>, %arg10: memref<128x128xf32, #tpu.memory_space<vmem>>, %arg11: memref<1x128xf32, #tpu.memory_space<vmem>>, %arg12: memref<128x128xf32, #tpu.memory_space<vmem>>, %arg13: memref<1x128xf32, #tpu.memory_space<vmem>>, %arg14: memref<8x128xf32, #tpu.memory_space<vmem>>, %arg15: memref<8x128xf32, #tpu.memory_space<vmem>>) attributes {dimension_semantics = [#tpu.dimension_semantics<arbitrary>], iteration_bounds = array<i64: 1>, scalar_prefetch = 1 : i64, scratch_operands = 1 : i64, tpu.core_type = #tpu.core_type<tc>, window_params = [{transform_indices = @transform_0, window_bounds = array<i64: 1, 16>}, {transform_indices = @transform_1, window_bounds = array<i64: 16, 16>}, {pipeline_mode = #tpu.pipeline_mode<synchronous>, transform_indices = @transform_2, window_bounds = array<i64: 16, 128>}, {pipeline_mode = #tpu.pipeline_mode<synchronous>, transform_indices = @transform_3, window_bounds = array<i64: 1, 128>}, {pipeline_mode = #tpu.pipeline_mode<synchronous>, transform_indices = @transform_4, window_bounds = array<i64: 128, 128>}, {pipeline_mode = #tpu.pipeline_mode<synchronous>, transform_indices = @transform_5, window_bounds = array<i64: 1, 128>}, {pipeline_mode = #tpu.pipeline_mode<synchronous>, transform_indices = @transform_6, window_bounds = array<i64: 128, 128>}, {pipeline_mode = #tpu.pipeline_mode<synchronous>, transform_indices = @transform_7, window_bounds = array<i64: 1, 128>}, {pipeline_mode = #tpu.pipeline_mode<synchronous>, transform_indices = @transform_8, window_bounds = array<i64: 128, 128>}, {pipeline_mode = #tpu.pipeline_mode<synchronous>, transform_indices = @transform_9, window_bounds = array<i64: 1, 128>}, {pipeline_mode = #tpu.pipeline_mode<synchronous>, transform_indices = @transform_10, window_bounds = array<i64: 128, 128>}, {pipeline_mode = #tpu.pipeline_mode<synchronous>, transform_indices = @transform_11, window_bounds = array<i64: 1, 128>}, {pipeline_mode = #tpu.pipeline_mode<synchronous>, transform_indices = @transform_12, window_bounds = array<i64: 8, 128>}]} {
    %c0_i32 = arith.constant 0 : i32
    %0 = arith.cmpi eq, %arg0, %c0_i32 : i32
    %1 = arith.extui %0 : i1 to i32
    %c0_i32_0 = arith.constant 0 : i32
    %2 = arith.cmpi ne, %1, %c0_i32_0 : i32
    scf.if %2 {
      %cst_20 = arith.constant 0.000000e+00 : f32
      %41 = vector.broadcast %cst_20 : f32 to vector<8x128xf32>
      %c0_21 = arith.constant 0 : index
      %c0_22 = arith.constant 0 : index
      %42 = vector.load %arg15[%c0_21, %c0_22] : memref<8x128xf32, #tpu.memory_space<vmem>>, vector<8x128xf32>
      tpu.vector_store %arg15[%c0_21, %c0_22], %41 {strides = array<i32>} : memref<8x128xf32, #tpu.memory_space<vmem>>, vector<8x128xf32>,
    } else {
    }
    %c0 = arith.constant 0 : index
    %c0_1 = arith.constant 0 : index
    %3 = vector.load %arg3[%c0, %c0_1] : memref<16x16xbf16, #tpu.memory_space<vmem>>, vector<16x16xbf16>
    %c0_2 = arith.constant 0 : index
    %c0_3 = arith.constant 0 : index
    %4 = vector.load %arg4[%c0_2, %c0_3] : memref<16x128xbf16, #tpu.memory_space<vmem>>, vector<16x128xbf16>
    %cst = arith.constant dense<0.000000e+00> : vector<16x128xf32>
    %5 = tpu.matmul %3, %4, %cst {dimension_numbers = #tpu.dot_dimension_numbers<[1], [0], [0], [1], [0, 0, 1, 1], [], []>} : vector<16x16xbf16>, vector<16x128xbf16>, vector<16x128xf32> -> vector<16x128xf32>
    %c0_4 = arith.constant 0 : index
    %c0_5 = arith.constant 0 : index
    %6 = vector.load %arg5[%c0_4, %c0_5] : memref<1x128xf32, #tpu.memory_space<vmem>>, vector<1x128xf32>
    %7 = vector.broadcast %6 : vector<1x128xf32> to vector<16x128xf32>
    %8 = arith.addf %5, %7 : vector<16x128xf32>
    %cst_6 = arith.constant 0.000000e+00 : f32
    %9 = vector.broadcast %cst_6 : f32 to vector<16x128xf32>
    %10 = arith.maximumf %8, %9 : vector<16x128xf32>
    %11 = arith.truncf %10 : vector<16x128xf32> to vector<16x128xbf16>
    %c0_7 = arith.constant 0 : index
    %c0_8 = arith.constant 0 : index
    %12 = vector.load %arg6[%c0_7, %c0_8] : memref<128x128xbf16, #tpu.memory_space<vmem>>, vector<128x128xbf16>
    %cst_9 = arith.constant dense<0.000000e+00> : vector<16x128xf32>
    %13 = tpu.matmul %11, %12, %cst_9 {dimension_numbers = #tpu.dot_dimension_numbers<[1], [0], [0], [1], [0, 0, 1, 1], [], []>} : vector<16x128xbf16>, vector<128x128xbf16>, vector<16x128xf32> -> vector<16x128xf32>
    %c0_10 = arith.constant 0 : index
    %c0_11 = arith.constant 0 : index
    %14 = vector.load %arg7[%c0_10, %c0_11] : memref<1x128xf32, #tpu.memory_space<vmem>>, vector<1x128xf32>
    %15 = vector.broadcast %14 : vector<1x128xf32> to vector<16x128xf32>
    %16 = arith.addf %13, %15 : vector<16x128xf32>
    %cst_12 = arith.constant 0.000000e+00 : f32
    %17 = vector.broadcast %cst_12 : f32 to vector<16x128xf32>
    %18 = arith.maximumf %16, %17 : vector<16x128xf32>
    %19 = arith.index_cast %arg0 : i32 to index
    %20 = memref.load %arg1[%19] : memref<1xi32, #tpu.memory_space<smem>>
    %21 = tpu.assume_multiple %20, 8 : i32
    %22 = tpu.iota {dimensions = array<i32: 0>} : vector<8x16xi32>
    %c0_13 = arith.constant 0 : index
    %c0_14 = arith.constant 0 : index
    %23 = vector.load %arg2[%c0_13, %c0_14] : memref<1x16xi32, #tpu.memory_space<vmem>>, vector<1x16xi32>
    %24 = vector.broadcast %21 : i32 to vector<8x16xi32>
    %25 = arith.addi %22, %24 : vector<8x16xi32>
    %26 = vector.broadcast %23 : vector<1x16xi32> to vector<8x16xi32>
    %27 = arith.cmpi eq, %26, %25 : vector<8x16xi32>
    %28 = arith.extui %27 : vector<8x16xi1> to vector<8x16xi32>
    %29 = arith.sitofp %28 : vector<8x16xi32> to vector<8x16xf32>
    %30 = arith.truncf %29 : vector<8x16xf32> to vector<8x16xbf16>
    %31 = arith.truncf %18 : vector<16x128xf32> to vector<16x128xbf16>
    %cst_15 = arith.constant dense<0.000000e+00> : vector<8x128xf32>
    %32 = tpu.matmul %30, %31, %cst_15 {dimension_numbers = #tpu.dot_dimension_numbers<[1], [0], [0], [1], [0, 0, 1, 1], [], []>} : vector<8x16xbf16>, vector<16x128xbf16>, vector<8x128xf32> -> vector<8x128xf32>
    %33 = arith.index_cast %21 : i32 to index
    %c0_16 = arith.constant 0 : index
    %34 = vector.load %arg15[%33, %c0_16] : memref<8x128xf32, #tpu.memory_space<vmem>>, vector<8x128xf32>
    %35 = arith.addf %34, %32 : vector<8x128xf32>
    %36 = arith.index_cast %21 : i32 to index
    %c0_17 = arith.constant 0 : index
    %37 = vector.load %arg15[%36, %c0_17] : memref<8x128xf32, #tpu.memory_space<vmem>>, vector<8x128xf32>
    tpu.vector_store %arg15[%36, %c0_17], %35 {strides = array<i32>} : memref<8x128xf32, #tpu.memory_space<vmem>>, vector<8x128xf32>,
    %c0_i32_18 = arith.constant 0 : i32
    %38 = arith.cmpi eq, %arg0, %c0_i32_18 : i32
    %39 = arith.extui %38 : i1 to i32
    %c0_i32_19 = arith.constant 0 : i32
    %40 = arith.cmpi ne, %39, %c0_i32_19 : i32
    scf.if %40 {
      %c0_20 = arith.constant 0 : index
      %c0_21 = arith.constant 0 : index
      %41 = vector.load %arg15[%c0_20, %c0_21] : memref<8x128xf32, #tpu.memory_space<vmem>>, vector<8x128xf32>
      %c0_22 = arith.constant 0 : index
      %c0_23 = arith.constant 0 : index
      %42 = vector.load %arg8[%c0_22, %c0_23] : memref<128x128xf32, #tpu.memory_space<vmem>>, vector<128x128xf32>
      %cst_24 = arith.constant dense<0.000000e+00> : vector<8x128xf32>
      %43 = tpu.matmul %41, %42, %cst_24 {dimension_numbers = #tpu.dot_dimension_numbers<[1], [0], [0], [1], [0, 0, 1, 1], [], []>} : vector<8x128xf32>, vector<128x128xf32>, vector<8x128xf32> -> vector<8x128xf32>
      %c0_25 = arith.constant 0 : index
      %c0_26 = arith.constant 0 : index
      %44 = vector.load %arg9[%c0_25, %c0_26] : memref<1x128xf32, #tpu.memory_space<vmem>>, vector<1x128xf32>
      %45 = vector.broadcast %44 : vector<1x128xf32> to vector<8x128xf32>
      %46 = arith.addf %43, %45 : vector<8x128xf32>
      %cst_27 = arith.constant 0.000000e+00 : f32
      %47 = vector.broadcast %cst_27 : f32 to vector<8x128xf32>
      %48 = arith.maximumf %46, %47 : vector<8x128xf32>
      %49 = arith.addf %48, %41 : vector<8x128xf32>
      %c0_28 = arith.constant 0 : index
      %c0_29 = arith.constant 0 : index
      %50 = vector.load %arg10[%c0_28, %c0_29] : memref<128x128xf32, #tpu.memory_space<vmem>>, vector<128x128xf32>
      %cst_30 = arith.constant dense<0.000000e+00> : vector<8x128xf32>
      %51 = tpu.matmul %49, %50, %cst_30 {dimension_numbers = #tpu.dot_dimension_numbers<[1], [0], [0], [1], [0, 0, 1, 1], [], []>} : vector<8x128xf32>, vector<128x128xf32>, vector<8x128xf32> -> vector<8x128xf32>
      %c0_31 = arith.constant 0 : index
      %c0_32 = arith.constant 0 : index
      %52 = vector.load %arg11[%c0_31, %c0_32] : memref<1x128xf32, #tpu.memory_space<vmem>>, vector<1x128xf32>
      %53 = vector.broadcast %52 : vector<1x128xf32> to vector<8x128xf32>
      %54 = arith.addf %51, %53 : vector<8x128xf32>
      %cst_33 = arith.constant 0.000000e+00 : f32
      %55 = vector.broadcast %cst_33 : f32 to vector<8x128xf32>
      %56 = arith.maximumf %54, %55 : vector<8x128xf32>
      %57 = arith.addf %56, %49 : vector<8x128xf32>
      %c0_34 = arith.constant 0 : index
      %c0_35 = arith.constant 0 : index
      %58 = vector.load %arg12[%c0_34, %c0_35] : memref<128x128xf32, #tpu.memory_space<vmem>>, vector<128x128xf32>
      %cst_36 = arith.constant dense<0.000000e+00> : vector<8x128xf32>
      %59 = tpu.matmul %57, %58, %cst_36 {dimension_numbers = #tpu.dot_dimension_numbers<[1], [0], [0], [1], [0, 0, 1, 1], [], []>} : vector<8x128xf32>, vector<128x128xf32>, vector<8x128xf32> -> vector<8x128xf32>
      %c0_37 = arith.constant 0 : index
      %c0_38 = arith.constant 0 : index
      %60 = vector.load %arg13[%c0_37, %c0_38] : memref<1x128xf32, #tpu.memory_space<vmem>>, vector<1x128xf32>
      %61 = vector.broadcast %60 : vector<1x128xf32> to vector<8x128xf32>
      %62 = arith.addf %59, %61 : vector<8x128xf32>
      %c0_39 = arith.constant 0 : index
      %c0_40 = arith.constant 0 : index
      %63 = vector.load %arg14[%c0_39, %c0_40] : memref<8x128xf32, #tpu.memory_space<vmem>>, vector<8x128xf32>
      tpu.vector_store %arg14[%c0_39, %c0_40], %62 {strides = array<i32>} : memref<8x128xf32, #tpu.memory_space<vmem>>, vector<8x128xf32>,
    } else {
    }
    return
  }
  func.func @transform_0(%arg0: i32, %arg1: memref<1xi32, #tpu.memory_space<smem>>) -> (i32, i32) {
    %c0_i32 = arith.constant 0 : i32
    %c0_i32_0 = arith.constant 0 : i32
    return %c0_i32, %arg0 : i32, i32
  }
  func.func @transform_1(%arg0: i32, %arg1: memref<1xi32, #tpu.memory_space<smem>>) -> (i32, i32) {
    %c0_i32 = arith.constant 0 : i32
    %c0_i32_0 = arith.constant 0 : i32
    return %arg0, %c0_i32 : i32, i32
  }
  func.func @transform_2(%arg0: i32, %arg1: memref<1xi32, #tpu.memory_space<smem>>) -> (i32, i32) {
    %c0_i32 = arith.constant 0 : i32
    %c0_i32_0 = arith.constant 0 : i32
    %c0_i32_1 = arith.constant 0 : i32
    return %c0_i32, %c0_i32_0 : i32, i32
  }
  func.func @transform_3(%arg0: i32, %arg1: memref<1xi32, #tpu.memory_space<smem>>) -> (i32, i32) {
    %c0_i32 = arith.constant 0 : i32
    %c0_i32_0 = arith.constant 0 : i32
    %c0_i32_1 = arith.constant 0 : i32
    return %c0_i32, %c0_i32_0 : i32, i32
  }
  func.func @transform_4(%arg0: i32, %arg1: memref<1xi32, #tpu.memory_space<smem>>) -> (i32, i32) {
    %c0_i32 = arith.constant 0 : i32
    %c0_i32_0 = arith.constant 0 : i32
    %c0_i32_1 = arith.constant 0 : i32
    return %c0_i32, %c0_i32_0 : i32, i32
  }
  func.func @transform_5(%arg0: i32, %arg1: memref<1xi32, #tpu.memory_space<smem>>) -> (i32, i32) {
    %c0_i32 = arith.constant 0 : i32
    %c0_i32_0 = arith.constant 0 : i32
    %c0_i32_1 = arith.constant 0 : i32
    return %c0_i32, %c0_i32_0 : i32, i32
  }
  func.func @transform_6(%arg0: i32, %arg1: memref<1xi32, #tpu.memory_space<smem>>) -> (i32, i32) {
    %c0_i32 = arith.constant 0 : i32
    %c0_i32_0 = arith.constant 0 : i32
    %c0_i32_1 = arith.constant 0 : i32
    return %c0_i32, %c0_i32_0 : i32, i32
  }
  func.func @transform_7(%arg0: i32, %arg1: memref<1xi32, #tpu.memory_space<smem>>) -> (i32, i32) {
    %c0_i32 = arith.constant 0 : i32
    %c0_i32_0 = arith.constant 0 : i32
    %c0_i32_1 = arith.constant 0 : i32
    return %c0_i32, %c0_i32_0 : i32, i32
  }
  func.func @transform_8(%arg0: i32, %arg1: memref<1xi32, #tpu.memory_space<smem>>) -> (i32, i32) {
    %c0_i32 = arith.constant 0 : i32
    %c0_i32_0 = arith.constant 0 : i32
    %c0_i32_1 = arith.constant 0 : i32
    return %c0_i32, %c0_i32_0 : i32, i32
  }
  func.func @transform_9(%arg0: i32, %arg1: memref<1xi32, #tpu.memory_space<smem>>) -> (i32, i32) {
    %c0_i32 = arith.constant 0 : i32
    %c0_i32_0 = arith.constant 0 : i32
    %c0_i32_1 = arith.constant 0 : i32
    return %c0_i32, %c0_i32_0 : i32, i32
  }
  func.func @transform_10(%arg0: i32, %arg1: memref<1xi32, #tpu.memory_space<smem>>) -> (i32, i32) {
    %c0_i32 = arith.constant 0 : i32
    %c0_i32_0 = arith.constant 0 : i32
    %c0_i32_1 = arith.constant 0 : i32
    return %c0_i32, %c0_i32_0 : i32, i32
  }
  func.func @transform_11(%arg0: i32, %arg1: memref<1xi32, #tpu.memory_space<smem>>) -> (i32, i32) {
    %c0_i32 = arith.constant 0 : i32
    %c0_i32_0 = arith.constant 0 : i32
    %c0_i32_1 = arith.constant 0 : i32
    return %c0_i32, %c0_i32_0 : i32, i32
  }
  func.func @transform_12(%arg0: i32, %arg1: memref<1xi32, #tpu.memory_space<smem>>) -> (i32, i32) {
    %c0_i32 = arith.constant 0 : i32
    %c0_i32_0 = arith.constant 0 : i32
    %c0_i32_1 = arith.constant 0 : i32
    return %c0_i32, %c0_i32_0 : i32, i32
  }
}

</mosaic_0001>

<bundles_post_ra>
// kernel: tpu_custom_call.1
= control target key start
LH: loop header
LB: loop body
LE: loop exit
PB: predicated region body
PF: predicated region fallthrough
CT: control target
= control target key end

     0   :  { %19 = vsyncpa [#allocation6], 0  ;;  %s1372_s0 = inlined_call_operand.<no memory space> [shape: s32[1], index: 0, kind: input, shape index: {}]   ;;  %s1373_s1 = inlined_call_operand.vmem [shape: s32[1,16], index: 1, kind: input, shape index: {}]   ;;  %s1374_s2 = inlined_call_operand.hbm [shape: bf16[16,16], index: 2, kind: input, shape index: {}]   ;;  %s1375_s3 = inlined_call_operand.vmem [shape: bf16[16,128], index: 3, kind: input, shape index: {}]   ;;  %s1376_s4 = inlined_call_operand.vmem [shape: f32[1,128], index: 4, kind: input, shape index: {}]   ;;  %s1377_s5 = inlined_call_operand.hbm [shape: bf16[128,128], index: 5, kind: input, shape index: {}]   ;;  %s1378_s6 = inlined_call_operand.vmem [shape: f32[1,128], index: 6, kind: input, shape index: {}]   ;;  %s1379_s7 = inlined_call_operand.hbm [shape: f32[128,128], index: 7, kind: input, shape index: {}]   ;;  %s1380_s8 = inlined_call_operand.vmem [shape: f32[1,128], index: 8, kind: input, shape index: {}]   ;;  %s1381_s9 = inlined_call_operand.hbm [shape: f32[128,128], index: 9, kind: input, shape index: {}]   ;;  %s1382_s10 = inlined_call_operand.vmem [shape: f32[1,128], index: 10, kind: input, shape index: {}]   ;;  %s1383_s11 = inlined_call_operand.hbm [shape: f32[128,128], index: 11, kind: input, shape index: {}]   ;;  %s1384_s12 = inlined_call_operand.vmem [shape: f32[1,128], index: 12, kind: input, shape index: {}]   ;;  %s1385_s13 = inlined_call_operand.hbm [shape: f32[8,128], index: 13, kind: output, shape index: {}]  }
   0x1   :  { %20 = vsyncpa [#allocation9], 0 }
   0x2   :  { %21 = vsyncpa [#allocation12], 0 }
   0x3   :  { %22 = vsyncpa [#allocation7], 0  ;;  %s1125_s25 = smov [#allocation8]   ;;  %s985_s29 = scalar_lea.hbm %s1377_s5, 1024 }
   0x4   :  { %s46_s26 = sshll.u32 %s1125_s25, 4  ;;  %p986_p0 = scmp.ne.s32.totalorder %s1377_s5, %s985_s29  ;;  %s47_s26 = int_to_ptr.vmem [resolvable:$true] %s46_s26 }
   0x5   :  { %p989_p1 = scmp.lt.u32.totalorder %s985_s29, %s1377_s5 }
   0x7   :  { %p991_p2 = pnand %p989_p1, %p986_p0 }
   0x9   :  { %994 = shalt.err (!%p991_p2)
}
   0xa   :  { %s995_s17 = scalar_lea.vmem %s47_s26, 1024  ;;  %p1000_p4 = scmp.lt.s32.totalorder %s47_s26, %s47_s26 }
   0xb   :  { %p996_p3 = scmp.ne.s32.totalorder %s47_s26, %s995_s17  ;;  %p1001_p5 = scmp.lt.s32.totalorder %s995_s17, %s995_s17 }
   0xd   :  { %p1002_p6 = por %p1001_p5, %p1000_p4 }
   0xf   :  { %p1003_p7 = pnand %p1002_p6, %p996_p3 }
  0x11   :  { %1006 = shalt.err (!%p1003_p7)
}
  0x12   :  { %s1126_s18 = smov 64   ;;  %s1127_s19 = smov 4  }
  0x13   :  { %52 = dma.hbm_to_vmem [thread:$0]  %s1377_s5, 1024, %s47_s26, [#allocation9], %s1126_s18, %s1126_s18, %s1127_s19  }
  0x14   :  { %s1128_s22 = smov [#allocation11]   ;;  %s1129_s24 = smov [#allocation5]  }
  0x15   :  { %s74_s23 = sshll.u32 %s1128_s22, 4  ;;  %s30_s25 = sshll.u32 %s1129_s24, 4  ;;  %s75_s23 = int_to_ptr.vmem [resolvable:$true] %s74_s23  ;;  %s31_s25 = int_to_ptr.vmem [resolvable:$true] %s30_s25 }
  0x16   :  { %s1007_s29 = scalar_lea.hbm %s1381_s9, 2048 }
  0x17   :  { %p1008_p8 = scmp.ne.s32.totalorder %s1381_s9, %s1007_s29  ;;  %p1011_p9 = scmp.lt.u32.totalorder %s1007_s29, %s1381_s9 }
  0x19   :  { %p1013_p10 = pnand %p1011_p9, %p1008_p8 }
  0x1b   :  { %1016 = shalt.err (!%p1013_p10)
}
  0x1c   :  { %s1017_s5 = scalar_lea.vmem %s75_s23, 2048  ;;  %p1022_p12 = scmp.lt.s32.totalorder %s75_s23, %s75_s23 }
  0x1d   :  { %p1018_p11 = scmp.ne.s32.totalorder %s75_s23, %s1017_s5  ;;  %p1023_p13 = scmp.lt.s32.totalorder %s1017_s5, %s1017_s5 }
  0x1f   :  { %p1024_p0 = por %p1023_p13, %p1022_p12 }
  0x21   :  { %p1025_p1 = pnand %p1024_p0, %p1018_p11 }
  0x23   :  { %1028 = shalt.err (!%p1025_p1)
}
  0x24   :  { %s1130_s26 = smov 128   ;;  %s1131_s17 = smov 8  }
  0x25   :  { %80 = dma.hbm_to_vmem [thread:$0]  %s1381_s9, 2048, %s75_s23, [#allocation12], %s1130_s26, %s1130_s26, %s1131_s17  }
  0x26   :  { %s1029_s27 = scalar_lea.hbm %s1374_s2, 128 }
  0x27   :  { %p1030_p2 = scmp.ne.s32.totalorder %s1374_s2, %s1029_s27  ;;  %p1033_p3 = scmp.lt.u32.totalorder %s1029_s27, %s1374_s2 }
  0x29   :  { %p1035_p4 = pnand %p1033_p3, %p1030_p2 }
  0x2b   :  { %1038 = shalt.err (!%p1035_p4)
}
  0x2c   :  { %s1039_s15 = scalar_lea.vmem %s31_s25, 128  ;;  %p1044_p6 = scmp.lt.s32.totalorder %s31_s25, %s31_s25 }
  0x2d   :  { %p1040_p5 = scmp.ne.s32.totalorder %s31_s25, %s1039_s15  ;;  %p1045_p7 = scmp.lt.s32.totalorder %s1039_s15, %s1039_s15 }
  0x2f   :  { %p1046_p8 = por %p1045_p7, %p1044_p6 }
  0x31   :  { %p1047_p9 = pnand %p1046_p8, %p1040_p5 }
  0x33   :  { %1050 = shalt.err (!%p1047_p9)
}
  0x34   :  { %36 = dma.hbm_to_vmem [thread:$0]  %s1374_s2, 128, %s31_s25, [#allocation6], %s1126_s18, %s1126_s18, %s1127_s19  }
  0x35   :  { %s1132_s16 = smov [#allocation10]   ;;  %s1133_s20 = smov [#allocation13]  }
  0x36   :  { %s60_s5 = sshll.u32 %s1132_s16, 4  ;;  %s88_s21 = sshll.u32 %s1133_s20, 4  ;;  %s61_s5 = int_to_ptr.vmem [resolvable:$true] %s60_s5  ;;  %s89_s21 = int_to_ptr.vmem [resolvable:$true] %s88_s21 }
  0x37   :  { %s1051_s27 = scalar_lea.hbm %s1379_s7, 2048 }
  0x38   :  { %p1052_p10 = scmp.ne.s32.totalorder %s1379_s7, %s1051_s27  ;;  %p1055_p11 = scmp.lt.u32.totalorder %s1051_s27, %s1379_s7 }
  0x3a   :  { %p1057_p12 = pnand %p1055_p11, %p1052_p10 }
  0x3c   :  { %1060 = shalt.err (!%p1057_p12)
}
  0x3d   :  { %s1061_s2 = scalar_lea.vmem %s61_s5, 2048  ;;  %p1066_p0 = scmp.lt.s32.totalorder %s61_s5, %s61_s5 }
  0x3e   :  { %p1062_p13 = scmp.ne.s32.totalorder %s61_s5, %s1061_s2  ;;  %p1067_p1 = scmp.lt.s32.totalorder %s1061_s2, %s1061_s2 }
  0x40   :  { %p1068_p2 = por %p1067_p1, %p1066_p0 }
  0x42   :  { %p1069_p3 = pnand %p1068_p2, %p1062_p13 }
  0x44   :  { %1072 = shalt.err (!%p1069_p3)
}
  0x45   :  { %66 = dma.hbm_to_vmem [thread:$0]  %s1379_s7, 2048, %s61_s5, [#allocation9], %s1130_s26, %s1130_s26, %s1131_s17  }
  0x46   :  { %s1073_s9 = scalar_lea.hbm %s1383_s11, 2048 }
  0x47   :  { %p1074_p4 = scmp.ne.s32.totalorder %s1383_s11, %s1073_s9  ;;  %p1077_p5 = scmp.lt.u32.totalorder %s1073_s9, %s1383_s11 }
  0x49   :  { %p1079_p6 = pnand %p1077_p5, %p1074_p4 }
  0x4b   :  { %1082 = shalt.err (!%p1079_p6)
}
  0x4c   :  { %s1083_s24 = scalar_lea.vmem %s89_s21, 2048  ;;  %p1088_p8 = scmp.lt.s32.totalorder %s89_s21, %s89_s21 }
  0x4d   :  { %p1084_p7 = scmp.ne.s32.totalorder %s89_s21, %s1083_s24  ;;  %p1089_p9 = scmp.lt.s32.totalorder %s1083_s24, %s1083_s24 }
  0x4f   :  { %p1090_p10 = por %p1089_p9, %p1088_p8 }
  0x51   :  { %p1091_p11 = pnand %p1090_p10, %p1084_p7 }
  0x53   :  { %1094 = shalt.err (!%p1091_p11)
}
  0x54   :  { %94 = dma.hbm_to_vmem [thread:$0]  %s1383_s11, 2048, %s89_s21, [#allocation12], %s1130_s26, %s1130_s26, %s1131_s17  }
  0x55   :  { %1117 = dma.done.wait [#allocation6], 128  }
  0x56   :  { %1118 = vsyncadd [#allocation6], 4294967168 }
  0x57   :  { %1119 = dma.done.wait [#allocation9], 3072  }
  0x58   :  { %1120 = vsyncadd [#allocation9], 4294964224 }
  0x59   :  { %1121 = dma.done.wait [#allocation12], 4096  }
  0x5a   :  { %1122 = vsyncadd [#allocation12], 4294963200  ;;  %v1134_v0 = vmov 0.0   ;;  %vm1135_vm0 = vmmov 0   ;;  %v975_v1 = vld [vmem:[%s1375_s3] sm:$0xff]   ;;  %v976_v2 = vld [vmem:[#allocation5] sm:$0xff]   ;;  %v303_v22 = vlaneseq  ;;  %v306_v24 = vstv %s1372_s0 }
  0x5b   :  { %753 = vmatprep.subr.bf16.mxu1 %v1134_v0  ;;  %117 = vst [vmem:[#allocation2] sm:$0xff] %v1134_v0  ;;  %755 = vmatprep.mubr.msk.bf16.mxu1 %vm1135_vm0, %v1134_v0  ;;  %vm140_vm1 = vcmask 130048   ;;  %v977_v3 = vld [vmem:[#allocation8] sm:$0xff]   ;;  %v978_v4 = vld [vmem:[#allocation8 + $0x8] sm:$0xff]   ;;  %v979_v5 = vld [vmem:[#allocation8 + $0x10] sm:$0xff]   ;;  %v1136_v21 = vmov 0.0|0.0  }
  0x5c   :  { %779 = vmatprep.subr.bf16.mxu0 %v1134_v0  ;;  %781 = vmatprep.mubr.msk.bf16.mxu0 %vm1135_vm0, %v1134_v0  ;;  %v980_v6 = vld [vmem:[#allocation8 + $0x18] sm:$0xff]   ;;  %v981_v7 = vld [vmem:[#allocation8 + $0x20] sm:$0xff]   ;;  %v982_v8 = vld [vmem:[#allocation8 + $0x28] sm:$0xff]   ;;  %v304_v23 = vshrl.u32 %v303_v22, 7  ;;  %s360_s14 = scalar_lea.vmem [#allocation2], %s1372_s0  ;;  %s1137_s15 = smov [#allocation14]  }
  0x5d   :  { %754 = vmatpush3.bf16.msra.mxu1 %v975_v1  ;;  %v983_v9 = vld [vmem:[#allocation8 + $0x30] sm:$0xff]   ;;  %v984_v10 = vld [vmem:[#allocation8 + $0x38] sm:$0xff]   ;;  %v368_v37 = vld [vmem:[#allocation10] sm:$0xff]  ;;  %s658_s9 = sshll.u32 %s1137_s15, 4  ;;  %s659_s9 = int_to_ptr.vmem [resolvable:$true] %s658_s9 }
  0x5e   :  { %759 = vmatprep.subr.bf16.mxu1 %v1134_v0  ;;  %v670_v11 = vld [vmem:[%s1376_s4] ss:$0 sm:$0xff]  ;;  %v307_v26 = vadd.s32 %v306_v24, %v304_v23  ;;  %v369_v38 = vld [vmem:[#allocation10 + $0x8] sm:$0xff]  ;;  %v371_v43 = vld [vmem:[#allocation10 + $0x18] sm:$0xff]  ;;  %s1095_s23 = scalar_lea.vmem %s659_s9, 128  ;;  %p1100_p13 = scmp.lt.s32.totalorder %s659_s9, %s659_s9 }
  0x5f   :  { %v674_v25 = vld [vmem:[%s1378_s6] ss:$0 sm:$0xff]  ;;  %v891_v41 = vpack.c.bf16 %v369_v38, %v368_v37  ;;  %v372_v45 = vld [vmem:[#allocation10 + $0x20] sm:$0xff]  ;;  %v373_v46 = vld [vmem:[#allocation10 + $0x28] sm:$0xff]  ;;  %p1096_p12 = scmp.ne.s32.totalorder %s659_s9, %s1095_s23  ;;  %p1101_p0 = scmp.lt.s32.totalorder %s1095_s23, %s1095_s23 }
  0x60   :  { %756 = vmatmul.mubr.msk.bf16.vlgmr.msra.gmra.mrb[0].mxu1 %vm140_vm1, %v976_v2  ;;  %v683_v27 = vld [vmem:[%s1373_s1] ss:$0 sm:$0xff]  ;;  %v897_v47 = vpack.c.bf16 %v373_v46, %v372_v45  ;;  %v375_v49 = vld [vmem:[#allocation10 + $0x38] sm:$0xff]  ;;  %v376_v51 = vld [vmem:[#allocation10 + $0x40] sm:$0xff] }
  0x61   :  { %760 = vmatpush3.bf16.msra.mxu1 %v977_v3  ;;  %775 = vmatprep.mubr.msk.bf16.mxu1 %vm1135_vm0, %v1134_v0  ;;  %vm312_vm2 = vcmp.eq.s32.totalorder %v683_v27, %v307_v26  ;;  %v370_v42 = vld [vmem:[#allocation10 + $0x10] sm:$0xff]  ;;  %v377_v52 = vld [vmem:[#allocation10 + $0x48] sm:$0xff]  ;;  %v379_v55 = vld [vmem:[#allocation10 + $0x58] sm:$0xff]  ;;  %p1102_p1 = por %p1101_p0, %p1100_p13 }
  0x62   :  { %761 = vmatprep.subr.bf16.mxu1 %v1134_v0  ;;  %v684_v36 = vsel %vm312_vm2, 1.0, %v1134_v0  ;;  %v894_v44 = vpack.c.bf16 %v371_v43, %v370_v42  ;;  %v374_v48 = vld [vmem:[#allocation10 + $0x30] sm:$0xff]  ;;  %v903_v53 = vpack.c.bf16 %v377_v52, %v376_v51  ;;  %v380_v57 = vld [vmem:[#allocation10 + $0x60] sm:$0xff]  ;;  %v381_v58 = vld [vmem:[#allocation10 + $0x68] sm:$0xff] }
  0x63   :  { %v315_v40 = vpack.c.bf16 %v684_v36, %v684_v36  ;;  %v900_v50 = vpack.c.bf16 %v375_v49, %v374_v48  ;;  %v378_v54 = vld [vmem:[#allocation10 + $0x50] sm:$0xff]  ;;  %v909_v59 = vpack.c.bf16 %v381_v58, %v380_v57  ;;  %v383_v61 = vld [vmem:[#allocation10 + $0x78] sm:$0xff]  ;;  %v463_v63 = vld [vmem:[#allocation11] sm:$0xff]  ;;  %p1103_p2 = pnand %p1102_p1, %p1096_p12 }
  0x64   :  { %v906_v56 = vpack.c.bf16 %v379_v55, %v378_v54  ;;  %v382_v60 = vld [vmem:[#allocation10 + $0x70] sm:$0xff]  ;;  %v464_v1 = vld [vmem:[#allocation11 + $0x8] sm:$0xff]  ;;  %v475_v26 = vld [vmem:[#allocation11 + $0x60] sm:$0xff] }
  0x65   :  { %762 = vmatpush3.bf16.msra.mxu1 %v978_v4  ;;  %v912_v62 = vpack.c.bf16 %v383_v61, %v382_v60  ;;  %v465_v2 = vld [vmem:[#allocation11 + $0x10] sm:$0xff]  ;;  %v915_v3 = vpack.c.bf16 %v464_v1, %v463_v63  ;;  %v466_v4 = vld [vmem:[#allocation11 + $0x18] sm:$0xff]  ;;  %v476_v27 = vld [vmem:[#allocation11 + $0x68] sm:$0xff] }
  0x66   :  { %763 = vmatprep.subr.bf16.mxu1 %v1134_v0  ;;  %v561_v36 = vld [vmem:[#allocation13 + $0x18] sm:$0xff]  ;;  %v563_v38 = vld [vmem:[#allocation13 + $0x28] sm:$0xff]  ;;  %v566_v43 = vld [vmem:[#allocation13 + $0x40] sm:$0xff] }
  0x67   :  { %v568_v46 = vld [vmem:[#allocation13 + $0x50] sm:$0xff]  ;;  %v570_v55 = vld [vmem:[#allocation13 + $0x60] sm:$0xff] }
  0x68   :  { %v686_v49 = vld [vmem:[%s1380_s8] ss:$0 sm:$0xff] }
  0x69   :  { %764 = vmatpush3.bf16.msra.mxu1 %v979_v5  ;;  %v918_v5 = vpack.c.bf16 %v466_v4, %v465_v2  ;;  %v572_v58 = vld [vmem:[#allocation13 + $0x70] sm:$0xff] }
  0x6a   :  { %765 = vmatprep.subr.bf16.mxu1 %v1134_v0  ;;  %v687_v61 = vld [vmem:[%s1382_s10] ss:$0 sm:$0xff] }
  0x6b   :  { %v688_v4 = vld [vmem:[%s1384_s12] ss:$0 sm:$0xff] }
  0x6d   :  { %766 = vmatpush3.bf16.msra.mxu1 %v980_v6  ;;  %v467_v6 = vld [vmem:[#allocation11 + $0x20] sm:$0xff] }
  0x6e   :  { %767 = vmatprep.subr.bf16.mxu1 %v1134_v0 }
  0x71   :  { %768 = vmatpush3.bf16.msra.mxu1 %v981_v7  ;;  %v468_v7 = vld [vmem:[#allocation11 + $0x28] sm:$0xff] }
  0x72   :  { %769 = vmatprep.subr.bf16.mxu1 %v1134_v0 }
  0x75   :  { %770 = vmatpush3.bf16.msra.mxu1 %v982_v8  ;;  %v921_v8 = vpack.c.bf16 %v468_v7, %v467_v6 }
  0x76   :  { %771 = vmatprep.subr.bf16.mxu1 %v1134_v0 }
  0x79   :  { %772 = vmatpush3.bf16.msra.mxu1 %v983_v9  ;;  %v469_v9 = vld [vmem:[#allocation11 + $0x30] sm:$0xff] }
  0x7a   :  { %773 = vmatprep.subr.bf16.mxu1 %v1134_v0 }
  0x7d   :  { %774 = vmatpush3.bf16.msra.mxu1 %v984_v10  ;;  %v470_v10 = vld [vmem:[#allocation11 + $0x38] sm:$0xff] }
  0x7e   :  { %914 = vmatprep.subr.bf16.mxu1 %v1136_v21 }
 0x133   :  { %v178_v12 = vpop.f32.mrb[0].mxu1 }
 0x134   :  { %v179_v13 = vadd.f32 %v670_v11, %v178_v12  ;;  %v757_v14 = vpop.f32.mrb[1].mxu1  ;;  %v471_v12 = vld [vmem:[#allocation11 + $0x40] sm:$0xff] }
 0x135   :  { %v181_v15 = vpop.f32.mrb[2].mxu1 }
 0x136   :  { %v182_v16 = vadd.f32 %v670_v11, %v181_v15  ;;  %v758_v17 = vpop.f32.mrb[3].mxu1  ;;  %v185_v18 = vmax.f32 %v179_v13, 0.0  ;;  %v924_v11 = vpack.c.bf16 %v470_v10, %v469_v9  ;;  %v472_v13 = vld [vmem:[#allocation11 + $0x48] sm:$0xff]  ;;  %v473_v15 = vld [vmem:[#allocation11 + $0x50] sm:$0xff] }
 0x137   :  { %v927_v14 = vpack.c.bf16 %v472_v13, %v471_v12 }
 0x138   :  { %v186_v19 = vmax.f32 %v182_v16, 0.0  ;;  %v474_v16 = vld [vmem:[#allocation11 + $0x58] sm:$0xff] }
 0x139   :  { %v930_v17 = vpack.c.bf16 %v474_v16, %v473_v15 }
 0x13a   :  { %v187_v20 = vpack.c.bf16 %v186_v19, %v185_v18  ;;  %v361_v18 = vld [vmem:[%s360_s14] sm:$0xff] }
 0x13c   :  { %776 = vmatmul.mubr.bf16.vlgmr.msra.gmra.mrb[4].mxu1 %v187_v20 }
 0x13d   :  { %852 = vmatprep.mubr.msk.f32.mxu1 %vm1135_vm0, %v1134_v0  ;;  %916 = vmatpush3.bf16.msra.mxu1 %v915_v3 }
 0x13e   :  { %917 = vmatprep.subr.bf16.mxu1 %v1136_v21 }
 0x141   :  { %919 = vmatpush3.bf16.msra.mxu1 %v918_v5 }
 0x142   :  { %920 = vmatprep.subr.bf16.mxu1 %v1136_v21 }
 0x145   :  { %922 = vmatpush3.bf16.msra.mxu1 %v921_v8 }
 0x146   :  { %923 = vmatprep.subr.bf16.mxu1 %v1136_v21 }
 0x149   :  { %925 = vmatpush3.bf16.msra.mxu1 %v924_v11 }
 0x14a   :  { %926 = vmatprep.subr.bf16.mxu1 %v1136_v21 }
 0x14d   :  { %928 = vmatpush3.bf16.msra.mxu1 %v927_v14 }
 0x14e   :  { %929 = vmatprep.subr.bf16.mxu1 %v1136_v21 }
 0x151   :  { %931 = vmatpush3.bf16.msra.mxu1 %v930_v17 }
 0x152   :  { %932 = vmatprep.subr.bf16.mxu1 %v1136_v21 }
 0x20f   :  { %v293_v28 = vpop.f32.mrb[4].mxu1 }
 0x210   :  { %v294_v29 = vadd.f32 %v674_v25, %v293_v28  ;;  %v777_v30 = vpop.f32.mrb[5].mxu1  ;;  %v933_v28 = vpack.c.bf16 %v476_v27, %v475_v26 }
 0x211   :  { %v296_v31 = vpop.f32.mrb[6].mxu1  ;;  %v478_v30 = vld [vmem:[#allocation11 + $0x78] sm:$0xff] }
 0x212   :  { %v297_v32 = vadd.f32 %v674_v25, %v296_v31  ;;  %v778_v33 = vpop.f32.mrb[7].mxu1  ;;  %v300_v34 = vmax.f32 %v294_v29, 0.0  ;;  %934 = vmatpush3.bf16.msra.mxu1 %v933_v28  ;;  %v477_v29 = vld [vmem:[#allocation11 + $0x70] sm:$0xff] }
 0x213   :  { %935 = vmatprep.subr.bf16.mxu1 %v1136_v21  ;;  %v936_v31 = vpack.c.bf16 %v478_v30, %v477_v29  ;;  %v559_v33 = vld [vmem:[#allocation13 + $0x8] sm:$0xff] }
 0x214   :  { %v301_v35 = vmax.f32 %v297_v32, 0.0  ;;  %v558_v32 = vld [vmem:[#allocation13] sm:$0xff] }
 0x216   :  { %v316_v39 = vpack.c.bf16 %v301_v35, %v300_v34  ;;  %937 = vmatpush3.bf16.msra.mxu1 %v936_v31  ;;  %v560_v34 = vld [vmem:[#allocation13 + $0x10] sm:$0xff]  ;;  %v939_v35 = vpack.c.bf16 %v559_v33, %v558_v32 }
 0x217   :  { %v942_v37 = vpack.c.bf16 %v561_v36, %v560_v34 }
 0x218   :  { %780 = vmatpush3.bf16.msra.mxu0 %v316_v39 }
 0x219   :  { %890 = vmatprep.subr.bf16.mxu0 %v1136_v21 }
 0x21b   :  { %782 = vmatmul.mubr.msk.bf16.vlgmr.msra.gmra.mrb[0].mxu0 %vm140_vm1, %v315_v40  ;;  %v564_v40 = vld [vmem:[#allocation13 + $0x30] sm:$0xff] }
 0x21c   :  { %892 = vmatpush3.bf16.msra.mxu0 %v891_v41  ;;  %817 = vmatprep.mubr.msk.f32.mxu0 %vm1135_vm0, %v1134_v0  ;;  %v565_v41 = vld [vmem:[#allocation13 + $0x38] sm:$0xff] }
 0x21d   :  { %893 = vmatprep.subr.bf16.mxu0 %v1136_v21  ;;  %v948_v42 = vpack.c.bf16 %v565_v41, %v564_v40 }
 0x220   :  { %895 = vmatpush3.bf16.msra.mxu0 %v894_v44  ;;  %v567_v44 = vld [vmem:[#allocation13 + $0x48] sm:$0xff] }
 0x221   :  { %896 = vmatprep.subr.bf16.mxu0 %v1136_v21  ;;  %v951_v45 = vpack.c.bf16 %v567_v44, %v566_v43 }
 0x224   :  { %898 = vmatpush3.bf16.msra.mxu0 %v897_v47  ;;  %v569_v47 = vld [vmem:[#allocation13 + $0x58] sm:$0xff] }
 0x225   :  { %899 = vmatprep.subr.bf16.mxu0 %v1136_v21  ;;  %v954_v48 = vpack.c.bf16 %v569_v47, %v568_v46 }
 0x228   :  { %901 = vmatpush3.bf16.msra.mxu0 %v900_v50 }
 0x229   :  { %902 = vmatprep.subr.bf16.mxu0 %v1136_v21 }
 0x22c   :  { %904 = vmatpush3.bf16.msra.mxu0 %v903_v53 }
 0x22d   :  { %905 = vmatprep.subr.bf16.mxu0 %v1136_v21 }
 0x230   :  { %907 = vmatpush3.bf16.msra.mxu0 %v906_v56  ;;  %v571_v56 = vld [vmem:[#allocation13 + $0x68] sm:$0xff] }
 0x231   :  { %908 = vmatprep.subr.bf16.mxu0 %v1136_v21  ;;  %v957_v57 = vpack.c.bf16 %v571_v56, %v570_v55 }
 0x234   :  { %910 = vmatpush3.bf16.msra.mxu0 %v909_v59  ;;  %v573_v59 = vld [vmem:[#allocation13 + $0x78] sm:$0xff] }
 0x235   :  { %911 = vmatprep.subr.bf16.mxu0 %v1136_v21  ;;  %v960_v60 = vpack.c.bf16 %v573_v59, %v572_v58 }
 0x238   :  { %913 = vmatpush3.bf16.msra.mxu0 %v912_v62 }
 0x239   :  { %938 = vmatprep.subr.bf16.mxu0 %v1136_v21 }
 0x2ee   :  { %v354_v19 = vpop.f32.mrb[0].mxu0 }
 0x2ef   :  { %v362_v20 = vadd.f32 %v361_v18, %v354_v19  ;;  %v783_v22 = vpop.f32.mrb[1].mxu0 }
 0x2f0   :  { %v357_v23 = vpop.f32.mrb[2].mxu0 }
 0x2f1   :  { %363 = vst [vmem:[%s360_s14] sm:$0xff] %v362_v20  ;;  %v784_v24 = vpop.f32.mrb[3].mxu0 }
 0x2f8   :  { %v367_v25 = vld [vmem:[#allocation2] sm:$0xff] }
 0x2f9   :  { %818 = vmatmul.mubr.f32.vlgmr.msra.gmra.mrb[4].mxu0 %v367_v25 }
 0x2fa   :  { %887 = vmatprep.mubr.msk.f32.mxu0 %vm1135_vm0, %v1134_v0  ;;  %940 = vmatpush3.bf16.msra.mxu0 %v939_v35  ;;  %v562_v0 = vld [vmem:[#allocation13 + $0x20] sm:$0xff] }
 0x2fb   :  { %941 = vmatprep.subr.bf16.mxu0 %v1136_v21  ;;  %v945_v39 = vpack.c.bf16 %v563_v38, %v562_v0 }
 0x2fe   :  { %943 = vmatpush3.bf16.msra.mxu0 %v942_v37 }
 0x2ff   :  { %944 = vmatprep.subr.bf16.mxu0 %v1136_v21 }
 0x302   :  { %946 = vmatpush3.bf16.msra.mxu0 %v945_v39 }
 0x303   :  { %947 = vmatprep.subr.bf16.mxu0 %v1136_v21 }
 0x306   :  { %949 = vmatpush3.bf16.msra.mxu0 %v948_v42 }
 0x307   :  { %950 = vmatprep.subr.bf16.mxu0 %v1136_v21 }
 0x30a   :  { %952 = vmatpush3.bf16.msra.mxu0 %v951_v45 }
 0x30b   :  { %953 = vmatprep.subr.bf16.mxu0 %v1136_v21 }
 0x30e   :  { %955 = vmatpush3.bf16.msra.mxu0 %v954_v48 }
 0x30f   :  { %956 = vmatprep.subr.bf16.mxu0 %v1136_v21 }
 0x312   :  { %958 = vmatpush3.bf16.msra.mxu0 %v957_v57 }
 0x313   :  { %959 = vmatprep.subr.bf16.mxu0 %v1136_v21 }
 0x316   :  { %961 = vmatpush3.bf16.msra.mxu0 %v960_v60 }
 0x3cc   :  { %v457_v50 = vpop.f32.mrb[4].mxu0 }
 0x3cd   :  { %v458_v51 = vadd.f32 %v686_v49, %v457_v50  ;;  %v819_v52 = vpop.f32.mrb[5].mxu0 }
 0x3cf   :  { %v461_v53 = vmax.f32 %v458_v51, 0.0 }
 0x3d1   :  { %v462_v54 = vadd.f32 %v461_v53, %v367_v25 }
 0x3d3   :  { %853 = vmatmul.mubr.f32.vlgmr.msra.gmra.mrb[8].mxu1 %v462_v54 }
 0x4a6   :  { %v552_v62 = vpop.f32.mrb[8].mxu1 }
 0x4a7   :  { %v553_v63 = vadd.f32 %v687_v61, %v552_v62  ;;  %v854_v1 = vpop.f32.mrb[9].mxu1 }
 0x4a9   :  { %v556_v2 = vmax.f32 %v553_v63, 0.0 }
 0x4ab   :  { %v557_v3 = vadd.f32 %v556_v2, %v462_v54 }
 0x4ad   :  { %888 = vmatmul.mubr.f32.vlgmr.msra.gmra.mrb[6].mxu0 %v557_v3 }
 0x580   :  { %v647_v21 = vpop.f32.mrb[6].mxu0 }
 0x581   :  { %v648_v5 = vadd.f32 %v688_v4, %v647_v21  ;;  %v889_v6 = vpop.f32.mrb[7].mxu0 }
 0x583   :  { %651 = vst [vmem:[#allocation14] sm:$0xff] %v648_v5 }
 0x584   :  { %1106 = shalt.err (!%p1103_p2)
}
 0x585   :  { %s1107_s20 = scalar_lea.hbm %s1385_s13, 128 }
 0x586   :  { %p1108_p3 = scmp.ne.s32.totalorder %s1385_s13, %s1107_s20  ;;  %p1111_p4 = scmp.lt.u32.totalorder %s1107_s20, %s1385_s13 }
 0x588   :  { %p1113_p5 = pnand %p1111_p4, %p1108_p3 }
 0x58a   :  { %1116 = shalt.err (!%p1113_p5)
}
 0x58b   :  { %661 = dma.vmem_to_hbm [thread:$0]  %s659_s9, 128, %s1385_s13, [#allocation7]  }
 0x58c   :  { %1123 = dma.done.wait [#allocation7], 128  }
 0x58d   :  { %1124 = vsyncadd [#allocation7], 4294967168 }
 0x58e   :  { %665 = vsyncpa [#allocation6], 1 }
 0x58f   :  { %666 = vsyncpa [#allocation9], 1 }
 0x590   :  { %667 = vsyncpa [#allocation12], 1 }
 0x591   :  { %668 = vsyncpa [#allocation7], 1 }

</bundles_post_ra>
